<compile_context>
chip_gen: v7x
topology: tpu7x:2x2x1
jax: 0.10.0
libtpu: 0.0.40
codegen_flags: <defaults>
</compile_context>

<pallas_src>
import jax
import jax.numpy as jnp
from jax import lax
from jax.experimental import pallas as pl
from jax.experimental.pallas import tpu as pltpu


def _round_up(x, m):
    return (x + m - 1) // m * m


def _attention_head_kernel(hq_ref, h_ref, wq_ref, bq_ref, wkv_ref, bkv_ref,
                           bias_ref, out_ref):
    # Q for this query-row tile (1/sqrt(dim_k) already folded into wq/bq).
    q = jnp.dot(hq_ref[...], wq_ref[...],
                preferred_element_type=jnp.float32) + bq_ref[...]

    # Fused K|V projection over all rows (one 256-lane MXU matmul).
    kv = jnp.dot(h_ref[...], wkv_ref[...],
                 preferred_element_type=jnp.float32) + bkv_ref[...]
    dkp = kv.shape[-1] // 2
    k = kv[:, :dkp]
    v = kv[:, dkp:]

    # logits = q @ k^T expressed by contracting the feature axis of both
    # operands (no explicit transpose).  bias already carries the mask
    # (-1e30 on masked / padded positions).
    logits = lax.dot_general(
        q.astype(jnp.bfloat16), k.astype(jnp.bfloat16),
        dimension_numbers=(((1,), (1,)), ((), ())),
        preferred_element_type=jnp.float32) + bias_ref[...]

    # Softmax over the key axis, in f32.
    m = jnp.max(logits, axis=-1, keepdims=True)
    e = jnp.exp(logits - m)
    denom = jnp.sum(e, axis=-1, keepdims=True)
    w = e * pl.reciprocal(denom, approx=True)

    # Weighted sum of values; output tile is lane-dense (last dim = 128*k).
    out_ref[...] = jnp.dot(w.astype(jnp.bfloat16), v.astype(jnp.bfloat16),
                           preferred_element_type=jnp.float32)


def graphormer_attention_head(H, Wq, bq, Wk, bk, Wv, bv, b_matrix,
                              attention_mask):
    """H: (N, hidden); W*: (hidden, dim_k); b*: (1, dim_k) or (dim_k,);
    b_matrix: (N, N) float; attention_mask: (N, N) bool.
    Returns (N, dim_k) float32 — matches the PyTorch module's forward."""
    N, hidden = H.shape
    dim_k = Wq.shape[1]
    scale = 1.0 / (dim_k ** 0.5)
    f32 = jnp.float32

    # Lane-dense padding of the head dim and (8,128)-friendly row padding.
    DK_PAD = _round_up(dim_k, 128)
    if N <= 128:
        N_pad = _round_up(N, 8)
        TQ = N_pad
    else:
        TQ = 128
        N_pad = _round_up(N, TQ)
    n_tiles = N_pad // TQ

    # Pad + cast node features (bf16 MXU operands, half the HBM traffic).
    H_pad = jnp.zeros((N_pad, hidden), f32).at[:N].set(H.astype(f32))
    H_bf16 = H_pad.astype(jnp.bfloat16)

    def pad_wb(W, b, s=1.0):
        Wp = jnp.zeros((hidden, DK_PAD), f32).at[:, :dim_k].set(
            W.astype(f32) * s)
        bp = jnp.zeros((1, DK_PAD), f32).at[:, :dim_k].set(
            b.reshape(1, -1).astype(f32) * s)
        return Wp, bp

    # Fold the 1/sqrt(dim_k) scale into the Q projection.
    Wq_p, bq_p = pad_wb(Wq, bq, scale)
    Wk_p, bk_p = pad_wb(Wk, bk)
    Wv_p, bv_p = pad_wb(Wv, bv)
    Wq_b = Wq_p.astype(jnp.bfloat16)
    Wkv_b = jnp.concatenate([Wk_p, Wv_p], axis=1).astype(jnp.bfloat16)
    bkv_p = jnp.concatenate([bk_p, bv_p], axis=1)

    # Fold mask into the graphormer bias; padded rows/cols are -1e30 too
    # (finite, so no NaN even for fully-masked rows).
    NEG = jnp.float32(-1e30)
    biased = jnp.full((N_pad, N_pad), NEG, f32)
    biased = biased.at[:N, :N].set(
        jnp.where(attention_mask, b_matrix.astype(f32), NEG))

    out = pl.pallas_call(
        _attention_head_kernel,
        out_shape=jax.ShapeDtypeStruct((N_pad, DK_PAD), jnp.float32),
        grid=(n_tiles,),
        in_specs=[
            # Query rows for this tile.
            pl.BlockSpec((TQ, hidden), lambda i: (i, 0)),
            # Full node features (constant index -> DMA'd once, resident).
            pl.BlockSpec((N_pad, hidden), lambda i: (0, 0)),
            pl.BlockSpec((hidden, DK_PAD), lambda i: (0, 0)),
            pl.BlockSpec((1, DK_PAD), lambda i: (0, 0)),
            pl.BlockSpec((hidden, 2 * DK_PAD), lambda i: (0, 0)),
            pl.BlockSpec((1, 2 * DK_PAD), lambda i: (0, 0)),
            # Mask-folded bias, tiled over query rows (pipelined).
            pl.BlockSpec((TQ, N_pad), lambda i: (i, 0)),
        ],
        out_specs=pl.BlockSpec((TQ, DK_PAD), lambda i: (i, 0)),
        compiler_params=pltpu.CompilerParams(
            dimension_semantics=("parallel",)),
    )(H_bf16, H_bf16, Wq_b, bq_p, Wkv_b, bkv_p, biased)

    return out[:N, :dim_k]


def _reference(H, Wq, bq, Wk, bk, Wv, bv, b_matrix, attention_mask):
    Q = H @ Wq + bq
    K = H @ Wk + bk
    V = H @ Wv + bv
    dim_k = Q.shape[-1]
    logits = jnp.where(attention_mask,
                       (Q @ K.T) / (dim_k ** 0.5) + b_matrix,
                       -jnp.inf)
    weights = jax.nn.softmax(logits, axis=-1)
    return weights @ V


if __name__ == "__main__":
    # Small shapes consistent with the module: N nodes, hidden_dim, dim_k.
    N, hidden_dim, dim_k = 8, 32, 16

    key = jax.random.PRNGKey(0)
    kH, kq, kbq, kk, kbk, kv, kbv, kb, km = jax.random.split(key, 9)

    H = jax.random.normal(kH, (N, hidden_dim), dtype=jnp.float32)

    # Deterministic "nn.Linear"-like parameters, stored as (in, out).
    bound = 1.0 / (hidden_dim ** 0.5)
    Wq = jax.random.uniform(kq, (hidden_dim, dim_k), minval=-bound, maxval=bound)
    bq = jax.random.uniform(kbq, (1, dim_k), minval=-bound, maxval=bound)
    Wk = jax.random.uniform(kk, (hidden_dim, dim_k), minval=-bound, maxval=bound)
    bk = jax.random.uniform(kbk, (1, dim_k), minval=-bound, maxval=bound)
    Wv = jax.random.uniform(kv, (hidden_dim, dim_k), minval=-bound, maxval=bound)
    bv = jax.random.uniform(kbv, (1, dim_k), minval=-bound, maxval=bound)

    b_matrix = jax.random.normal(kb, (N, N), dtype=jnp.float32)
    # Random boolean mask; force the diagonal on so every row has >=1 valid entry.
    attention_mask = jax.random.bernoulli(km, 0.6, (N, N)) | jnp.eye(N, dtype=bool)

    out = graphormer_attention_head(H, Wq, bq, Wk, bk, Wv, bv,
                                    b_matrix, attention_mask)
    out = jax.block_until_ready(out)

    ref = _reference(H, Wq, bq, Wk, bk, Wv, bv, b_matrix, attention_mask)
    assert out.shape == (N, dim_k)
    # bf16 MXU operands + approx reciprocal -> loosen tolerance vs f32 ref.
    assert jnp.allclose(out, ref, atol=5e-2, rtol=5e-2), "mismatch vs reference"

    print("KERNEL_OK")
</pallas_src>

<mosaic_0001>
module attributes {stable_mosaic.version = 11 : i64} {
  func.func @_attention_head_kernel(%arg0: i32, %arg1: memref<8x32xbf16, #tpu.memory_space<vmem>>, %arg2: memref<8x32xbf16, #tpu.memory_space<vmem>>, %arg3: memref<32x128xbf16, #tpu.memory_space<vmem>>, %arg4: memref<1x128xf32, #tpu.memory_space<vmem>>, %arg5: memref<32x256xbf16, #tpu.memory_space<vmem>>, %arg6: memref<1x256xf32, #tpu.memory_space<vmem>>, %arg7: memref<8x8xf32, #tpu.memory_space<vmem>>, %arg8: memref<8x128xf32, #tpu.memory_space<vmem>>) attributes {dimension_semantics = [#tpu.dimension_semantics<parallel>], iteration_bounds = array<i64: 1>, scalar_prefetch = 0 : i64, scratch_operands = 0 : i64, tpu.core_type = #tpu.core_type<tc>, window_params = [{transform_indices = @transform_0, window_bounds = array<i64: 8, 32>}, {pipeline_mode = #tpu.pipeline_mode<synchronous>, transform_indices = @transform_1, window_bounds = array<i64: 8, 32>}, {pipeline_mode = #tpu.pipeline_mode<synchronous>, transform_indices = @transform_2, window_bounds = array<i64: 32, 128>}, {pipeline_mode = #tpu.pipeline_mode<synchronous>, transform_indices = @transform_3, window_bounds = array<i64: 1, 128>}, {pipeline_mode = #tpu.pipeline_mode<synchronous>, transform_indices = @transform_4, window_bounds = array<i64: 32, 256>}, {pipeline_mode = #tpu.pipeline_mode<synchronous>, transform_indices = @transform_5, window_bounds = array<i64: 1, 256>}, {transform_indices = @transform_6, window_bounds = array<i64: 8, 8>}, {transform_indices = @transform_7, window_bounds = array<i64: 8, 128>}]} {
    %c0 = arith.constant 0 : index
    %c0_0 = arith.constant 0 : index
    %0 = vector.load %arg1[%c0, %c0_0] : memref<8x32xbf16, #tpu.memory_space<vmem>>, vector<8x32xbf16>
    %c0_1 = arith.constant 0 : index
    %c0_2 = arith.constant 0 : index
    %1 = vector.load %arg3[%c0_1, %c0_2] : memref<32x128xbf16, #tpu.memory_space<vmem>>, vector<32x128xbf16>
    %cst = arith.constant dense<0.000000e+00> : vector<8x128xf32>
    %2 = tpu.matmul %0, %1, %cst {dimension_numbers = #tpu.dot_dimension_numbers<[1], [0], [0], [1], [0, 0, 1, 1], [], []>} : vector<8x32xbf16>, vector<32x128xbf16>, vector<8x128xf32> -> vector<8x128xf32>
    %c0_3 = arith.constant 0 : index
    %c0_4 = arith.constant 0 : index
    %3 = vector.load %arg4[%c0_3, %c0_4] : memref<1x128xf32, #tpu.memory_space<vmem>>, vector<1x128xf32>
    %4 = vector.broadcast %3 : vector<1x128xf32> to vector<8x128xf32>
    %5 = arith.addf %2, %4 : vector<8x128xf32>
    %c0_5 = arith.constant 0 : index
    %c0_6 = arith.constant 0 : index
    %6 = vector.load %arg2[%c0_5, %c0_6] : memref<8x32xbf16, #tpu.memory_space<vmem>>, vector<8x32xbf16>
    %c0_7 = arith.constant 0 : index
    %c0_8 = arith.constant 0 : index
    %7 = vector.load %arg5[%c0_7, %c0_8] : memref<32x256xbf16, #tpu.memory_space<vmem>>, vector<32x256xbf16>
    %cst_9 = arith.constant dense<0.000000e+00> : vector<8x256xf32>
    %8 = tpu.matmul %6, %7, %cst_9 {dimension_numbers = #tpu.dot_dimension_numbers<[1], [0], [0], [1], [0, 0, 1, 1], [], []>} : vector<8x32xbf16>, vector<32x256xbf16>, vector<8x256xf32> -> vector<8x256xf32>
    %c0_10 = arith.constant 0 : index
    %c0_11 = arith.constant 0 : index
    %9 = vector.load %arg6[%c0_10, %c0_11] : memref<1x256xf32, #tpu.memory_space<vmem>>, vector<1x256xf32>
    %10 = vector.broadcast %9 : vector<1x256xf32> to vector<8x256xf32>
    %11 = arith.addf %8, %10 : vector<8x256xf32>
    %12 = vector.extract_strided_slice %11 {offsets = [0, 0], sizes = [8, 128], strides = [1, 1]} : vector<8x256xf32> to vector<8x128xf32>
    %13 = vector.extract_strided_slice %11 {offsets = [0, 128], sizes = [8, 128], strides = [1, 1]} : vector<8x256xf32> to vector<8x128xf32>
    %14 = arith.truncf %5 : vector<8x128xf32> to vector<8x128xbf16>
    %15 = arith.truncf %12 : vector<8x128xf32> to vector<8x128xbf16>
    %cst_12 = arith.constant dense<0.000000e+00> : vector<8x8xf32>
    %16 = tpu.matmul %14, %15, %cst_12 {dimension_numbers = #tpu.dot_dimension_numbers<[1], [1], [0], [0], [0, 0, 1, 0], [], []>} : vector<8x128xbf16>, vector<8x128xbf16>, vector<8x8xf32> -> vector<8x8xf32>
    %c0_13 = arith.constant 0 : index
    %c0_14 = arith.constant 0 : index
    %17 = vector.load %arg7[%c0_13, %c0_14] : memref<8x8xf32, #tpu.memory_space<vmem>>, vector<8x8xf32>
    %18 = arith.addf %16, %17 : vector<8x8xf32>
    %cst_15 = arith.constant dense<0xFF800000> : vector<8xf32>
    %19 = vector.multi_reduction <maximumf>, %18, %cst_15 [1] : vector<8x8xf32> to vector<8xf32>
    %20 = vector.shape_cast %19 : vector<8xf32> to vector<8x1xf32>
    %21 = vector.broadcast %20 : vector<8x1xf32> to vector<8x8xf32>
    %22 = arith.subf %18, %21 : vector<8x8xf32>
    %23 = math.exp %22 : vector<8x8xf32>
    %cst_16 = arith.constant dense<0.000000e+00> : vector<8xf32>
    %24 = vector.multi_reduction <add>, %23, %cst_16 [1] : vector<8x8xf32> to vector<8xf32>
    %25 = vector.shape_cast %24 : vector<8xf32> to vector<8x1xf32>
    %26 = tpu.reciprocal %25 {approx = true} : vector<8x1xf32> -> vector<8x1xf32>
    %27 = vector.broadcast %26 : vector<8x1xf32> to vector<8x8xf32>
    %28 = arith.mulf %23, %27 : vector<8x8xf32>
    %29 = arith.truncf %28 : vector<8x8xf32> to vector<8x8xbf16>
    %30 = arith.truncf %13 : vector<8x128xf32> to vector<8x128xbf16>
    %cst_17 = arith.constant dense<0.000000e+00> : vector<8x128xf32>
    %31 = tpu.matmul %29, %30, %cst_17 {dimension_numbers = #tpu.dot_dimension_numbers<[1], [0], [0], [1], [0, 0, 1, 1], [], []>} : vector<8x8xbf16>, vector<8x128xbf16>, vector<8x128xf32> -> vector<8x128xf32>
    %c0_18 = arith.constant 0 : index
    %c0_19 = arith.constant 0 : index
    %32 = vector.load %arg8[%c0_18, %c0_19] : memref<8x128xf32, #tpu.memory_space<vmem>>, vector<8x128xf32>
    tpu.vector_store %arg8[%c0_18, %c0_19], %31 {strides = array<i32>} : memref<8x128xf32, #tpu.memory_space<vmem>>, vector<8x128xf32>,
    return
  }
  func.func @transform_0(%arg0: i32) -> (i32, i32) {
    %c0_i32 = arith.constant 0 : i32
    %c0_i32_0 = arith.constant 0 : i32
    return %arg0, %c0_i32 : i32, i32
  }
  func.func @transform_1(%arg0: i32) -> (i32, i32) {
    %c0_i32 = arith.constant 0 : i32
    %c0_i32_0 = arith.constant 0 : i32
    %c0_i32_1 = arith.constant 0 : i32
    return %c0_i32, %c0_i32_0 : i32, i32
  }
  func.func @transform_2(%arg0: i32) -> (i32, i32) {
    %c0_i32 = arith.constant 0 : i32
    %c0_i32_0 = arith.constant 0 : i32
    %c0_i32_1 = arith.constant 0 : i32
    return %c0_i32, %c0_i32_0 : i32, i32
  }
  func.func @transform_3(%arg0: i32) -> (i32, i32) {
    %c0_i32 = arith.constant 0 : i32
    %c0_i32_0 = arith.constant 0 : i32
    %c0_i32_1 = arith.constant 0 : i32
    return %c0_i32, %c0_i32_0 : i32, i32
  }
  func.func @transform_4(%arg0: i32) -> (i32, i32) {
    %c0_i32 = arith.constant 0 : i32
    %c0_i32_0 = arith.constant 0 : i32
    %c0_i32_1 = arith.constant 0 : i32
    return %c0_i32, %c0_i32_0 : i32, i32
  }
  func.func @transform_5(%arg0: i32) -> (i32, i32) {
    %c0_i32 = arith.constant 0 : i32
    %c0_i32_0 = arith.constant 0 : i32
    %c0_i32_1 = arith.constant 0 : i32
    return %c0_i32, %c0_i32_0 : i32, i32
  }
  func.func @transform_6(%arg0: i32) -> (i32, i32) {
    %c0_i32 = arith.constant 0 : i32
    %c0_i32_0 = arith.constant 0 : i32
    return %arg0, %c0_i32 : i32, i32
  }
  func.func @transform_7(%arg0: i32) -> (i32, i32) {
    %c0_i32 = arith.constant 0 : i32
    %c0_i32_0 = arith.constant 0 : i32
    return %arg0, %c0_i32 : i32, i32
  }
}

</mosaic_0001>

<bundles_post_ra>
// kernel: tpu_custom_call.1
= control target key start
LH: loop header
LB: loop body
LE: loop exit
PB: predicated region body
PF: predicated region fallthrough
CT: control target
= control target key end

     0   :  { %12 = vsyncpa [#allocation3], 0  ;;  %s656_s0 = inlined_call_operand.hbm [shape: bf16[8,32], index: 0, kind: input, shape index: {}]   ;;  %s657_s1 = inlined_call_operand.hbm [shape: bf16[8,32], index: 1, kind: input, shape index: {}]   ;;  %s658_s2 = inlined_call_operand.hbm [shape: bf16[32,128], index: 2, kind: input, shape index: {}]   ;;  %s659_s3 = inlined_call_operand.vmem [shape: f32[1,128], index: 3, kind: input, shape index: {}]   ;;  %s660_s4 = inlined_call_operand.hbm [shape: bf16[32,256], index: 4, kind: input, shape index: {}]   ;;  %s661_s5 = inlined_call_operand.vmem [shape: f32[1,256], index: 5, kind: input, shape index: {}]   ;;  %s662_s6 = inlined_call_operand.vmem [shape: f32[8,8], index: 6, kind: input, shape index: {}]   ;;  %s663_s7 = inlined_call_operand.hbm [shape: f32[8,128], index: 7, kind: output, shape index: {}]  }
   0x1   :  { %13 = vsyncpa [#allocation6], 0 }
   0x2   :  { %14 = vsyncpa [#allocation9], 0 }
   0x3   :  { %15 = vsyncpa [#allocation4], 0  ;;  %s529_s24 = smov [#allocation5]   ;;  %s530_s26 = smov [#allocation2]  }
   0x4   :  { %s32_s25 = sshll.u32 %s529_s24, 4  ;;  %s22_s27 = sshll.u32 %s530_s26, 4  ;;  %s33_s25 = int_to_ptr.vmem [resolvable:$true] %s32_s25  ;;  %s23_s27 = int_to_ptr.vmem [resolvable:$true] %s22_s27 }
   0x5   :  { %s411_s30 = scalar_lea.hbm %s657_s1, 64 }
   0x6   :  { %p412_p0 = scmp.ne.s32.totalorder %s657_s1, %s411_s30  ;;  %p415_p1 = scmp.lt.u32.totalorder %s411_s30, %s657_s1 }
   0x8   :  { %p417_p2 = pnand %p415_p1, %p412_p0 }
   0xa   :  { %420 = shalt.err (!%p417_p2)
}
   0xb   :  { %s421_s12 = scalar_lea.vmem %s33_s25, 64  ;;  %p426_p4 = scmp.lt.s32.totalorder %s33_s25, %s33_s25 }
   0xc   :  { %p422_p3 = scmp.ne.s32.totalorder %s33_s25, %s421_s12  ;;  %p427_p5 = scmp.lt.s32.totalorder %s421_s12, %s421_s12 }
   0xe   :  { %p428_p6 = por %p427_p5, %p426_p4 }
  0x10   :  { %p429_p7 = pnand %p428_p6, %p422_p3 }
  0x12   :  { %432 = shalt.err (!%p429_p7)
}
  0x13   :  { %35 = dma.hbm_to_vmem [thread:$0]  %s657_s1, 64, %s33_s25, [#allocation6]  }
  0x14   :  { %s433_s17 = scalar_lea.hbm %s656_s0, 64 }
  0x15   :  { %p434_p8 = scmp.ne.s32.totalorder %s656_s0, %s433_s17  ;;  %p437_p9 = scmp.lt.u32.totalorder %s433_s17, %s656_s0 }
  0x17   :  { %p439_p10 = pnand %p437_p9, %p434_p8 }
  0x19   :  { %442 = shalt.err (!%p439_p10)
}
  0x1a   :  { %s443_s22 = scalar_lea.vmem %s23_s27, 64  ;;  %p448_p12 = scmp.lt.s32.totalorder %s23_s27, %s23_s27 }
  0x1b   :  { %p444_p11 = scmp.ne.s32.totalorder %s23_s27, %s443_s22  ;;  %p449_p13 = scmp.lt.s32.totalorder %s443_s22, %s443_s22 }
  0x1d   :  { %p450_p0 = por %p449_p13, %p448_p12 }
  0x1f   :  { %p451_p1 = pnand %p450_p0, %p444_p11 }
  0x21   :  { %454 = shalt.err (!%p451_p1)
}
  0x22   :  { %25 = dma.hbm_to_vmem [thread:$0]  %s656_s0, 64, %s23_s27, [#allocation3]  }
  0x23   :  { %s531_s24 = smov [#allocation7]   ;;  %s455_s29 = scalar_lea.hbm %s658_s2, 256 }
  0x24   :  { %s41_s25 = sshll.u32 %s531_s24, 4  ;;  %p456_p2 = scmp.ne.s32.totalorder %s658_s2, %s455_s29  ;;  %s42_s25 = int_to_ptr.vmem [resolvable:$true] %s41_s25 }
  0x25   :  { %p459_p3 = scmp.lt.u32.totalorder %s455_s29, %s658_s2 }
  0x27   :  { %p461_p4 = pnand %p459_p3, %p456_p2 }
  0x29   :  { %464 = shalt.err (!%p461_p4)
}
  0x2a   :  { %s465_s11 = scalar_lea.vmem %s42_s25, 256  ;;  %p470_p6 = scmp.lt.s32.totalorder %s42_s25, %s42_s25 }
  0x2b   :  { %p466_p5 = scmp.ne.s32.totalorder %s42_s25, %s465_s11  ;;  %p471_p7 = scmp.lt.s32.totalorder %s465_s11, %s465_s11 }
  0x2d   :  { %p472_p8 = por %p471_p7, %p470_p6 }
  0x2f   :  { %p473_p9 = pnand %p472_p8, %p466_p5 }
  0x31   :  { %476 = shalt.err (!%p473_p9)
}
  0x32   :  { %s532_s0 = smov 64   ;;  %s533_s27 = smov 4  }
  0x33   :  { %47 = dma.hbm_to_vmem [thread:$0]  %s658_s2, 256, %s42_s25, [#allocation6], %s532_s0, %s532_s0, %s533_s27  }
  0x34   :  { %s534_s14 = smov [#allocation8]   ;;  %s477_s18 = scalar_lea.hbm %s660_s4, 512 }
  0x35   :  { %s55_s15 = sshll.u32 %s534_s14, 4  ;;  %p478_p10 = scmp.ne.s32.totalorder %s660_s4, %s477_s18  ;;  %s56_s15 = int_to_ptr.vmem [resolvable:$true] %s55_s15 }
  0x36   :  { %p481_p11 = scmp.lt.u32.totalorder %s477_s18, %s660_s4 }
  0x38   :  { %p483_p12 = pnand %p481_p11, %p478_p10 }
  0x3a   :  { %486 = shalt.err (!%p483_p12)
}
  0x3b   :  { %s487_s1 = scalar_lea.vmem %s56_s15, 512  ;;  %p492_p0 = scmp.lt.s32.totalorder %s56_s15, %s56_s15 }
  0x3c   :  { %p488_p13 = scmp.ne.s32.totalorder %s56_s15, %s487_s1  ;;  %p493_p1 = scmp.lt.s32.totalorder %s487_s1, %s487_s1 }
  0x3e   :  { %p494_p2 = por %p493_p1, %p492_p0 }
  0x40   :  { %p495_p3 = pnand %p494_p2, %p488_p13 }
  0x42   :  { %498 = shalt.err (!%p495_p3)
}
  0x43   :  { %s535_s2 = smov 128   ;;  %s536_s23 = smov 8  }
  0x44   :  { %61 = dma.hbm_to_vmem [thread:$0]  %s660_s4, 512, %s56_s15, [#allocation9], %s535_s2, %s535_s2, %s536_s23  }
  0x45   :  { %521 = dma.done.wait [#allocation3], 64  }
  0x46   :  { %522 = vsyncadd [#allocation3], 4294967232 }
  0x47   :  { %523 = dma.done.wait [#allocation6], 320  }
  0x48   :  { %524 = vsyncadd [#allocation6], 4294966976 }
  0x49   :  { %525 = dma.done.wait [#allocation9], 512  }
  0x4a   :  { %526 = vsyncadd [#allocation9], 4294966784  ;;  %v537_v0 = vmov 0.0   ;;  %v538_v1 = vmov 0   ;;  %vm539_vm0 = vmmov 0   ;;  %v405_v6 = vld [vmem:[#allocation7] sm:$0xff]   ;;  %v154_v10 = vlaneseq }
  0x4b   :  { %367 = vmatprep.subr.bf16.mxu0 %v537_v0  ;;  %219 = vmatprep.mubr.bf16.mxu1 %v538_v1  ;;  %v399_v2 = vld [vmem:[#allocation8 + $0x4] ss:$8 sps:$4 sm:$0xff]   ;;  %v401_v3 = vld [vmem:[#allocation8] ss:$8 sps:$4 sm:$0xff]   ;;  %v402_v4 = vld [vmem:[#allocation8 + $0x14] ss:$8 sps:$4 sm:$0xff]  }
  0x4c   :  { %371 = vmatprep.mubr.msk.bf16.mxu0 %vm539_vm0, %v537_v0  ;;  %187 = vmatprep.subr.bf16.mxu1 %v399_v2  ;;  %v404_v5 = vld [vmem:[#allocation8 + $0x10] ss:$8 sps:$4 sm:$0xff]   ;;  %vm103_vm1 = vcmask 261120   ;;  %v147_v8 = vld [vmem:[#allocation5] sm:$0xf]  ;;  %v155_v11 = vshrl.u32 %v154_v10, 7 }
  0x4d   :  { %188 = vmatpush1.bf16.msra.mxu1 %v401_v3  ;;  %368 = vmatpush3.bf16.msra.mxu0 %v405_v6  ;;  %v406_v7 = vld [vmem:[#allocation7 + $0x8] sm:$0xff]   ;;  %v79_v9 = vld [vmem:[#allocation2] sm:$0xf]  ;;  %v152_v13 = vld [vmem:[%s661_s5] sm:$0x3]  ;;  %vm288_vm2 = vcmask 1043456  }
  0x4e   :  { %189 = vmatprep.subr.bf16.mxu1 %v402_v4  ;;  %369 = vmatprep.subr.bf16.mxu0 %v537_v0  ;;  %v156_v12 = vsub.s32 0, %v155_v11  ;;  %v160_v14 = vsub.s32 1, %v155_v11  ;;  %v350_v20 = vld [vmem:[%s659_s3] ss:$0 sm:$0xff]  ;;  %vm271_vm3 = vcmask 64512   ;;  %s540_s3 = smov [#allocation10]  }
  0x4f   :  { %v230_v33 = vld [vmem:[%s662_s6] sm:$0xff]  ;;  %s339_s6 = sshll.u32 %s540_s3, 4  ;;  %s340_s6 = int_to_ptr.vmem [resolvable:$true] %s339_s6 }
  0x50   :  { %v157_v15 = vrot.slane %v152_v13, %v156_v12  ;;  %v161_v16 = vrot.slane %v152_v13, %v160_v14  ;;  %s499_s8 = scalar_lea.vmem %s340_s6, 128  ;;  %p504_p5 = scmp.lt.s32.totalorder %s340_s6, %s340_s6 }
  0x51   :  { %190 = vmatpush1.bf16.msra.mxu1 %v404_v5  ;;  %370 = vmatpush3.bf16.msra.mxu0 %v406_v7  ;;  %p500_p4 = scmp.ne.s32.totalorder %s340_s6, %s499_s8  ;;  %p505_p6 = scmp.lt.s32.totalorder %s499_s8, %s499_s8 }
  0x52   :  { %381 = vmatprep.subr.bf16.mxu1 %v537_v0  ;;  %375 = vmatprep.subr.bf16.mxu0 %v537_v0 }
  0x53   :  { %p506_p7 = por %p505_p6, %p504_p5 }
  0x54   :  { %358 = vmatmul.mubr.msk.bf16.vlgmr.msra.gmra.mrb[0].mxu1 %vm103_vm1, %v147_v8  ;;  %372 = vmatmul.mubr.msk.bf16.vlgmr.msra.gmra.mrb[0].mxu0 %vm103_vm1, %v79_v9 }
  0x55   :  { %383 = vmatprep.mubr.msk.bf16.mxu1 %vm539_vm0, %v537_v0  ;;  %377 = vmatprep.mubr.msk.bf16.mxu0 %vm539_vm0, %v537_v0  ;;  %p507_p8 = pnand %p506_p7, %p500_p4 }
 0x127   :  { %v221_v17 = vpop.f32.mrb[0].mxu1  ;;  %v141_v23 = vpop.f32.mrb[0].mxu0 }
 0x128   :  { %v222_v18 = vadd.f32 %v221_v17, %v157_v15  ;;  %v223_v19 = vpop.f32.mrb[1].mxu1  ;;  %v373_v26 = vpop.f32.mrb[1].mxu0  ;;  %v142_v28 = vadd.f32 %v350_v20, %v141_v23 }
 0x129   :  { %v224_v21 = vadd.f32 %v223_v19, %v161_v16  ;;  %v225_v22 = vpop.f32.mrb[2].mxu1  ;;  %v144_v29 = vpop.f32.mrb[2].mxu0 }
 0x12a   :  { %v229_v24 = vpack.c.bf16 %v222_v18, %v222_v18  ;;  %v226_v25 = vpop.f32.mrb[3].mxu1  ;;  %v374_v30 = vpop.f32.mrb[3].mxu0  ;;  %v228_v32 = vpack.c.bf16 %v142_v28, %v142_v28 }
 0x12b   :  { %v284_v27 = vpack.c.bf16 %v224_v21, %v224_v21 }
 0x12c   :  { %376 = vmatpush3.bf16.xpose.msra.mxu0 %v229_v24 }
 0x12d   :  { %v290_v31 = vsel %vm288_vm2, %v284_v27, 0 }
 0x12e   :  { %382 = vmatpush3.bf16.msra.mxu1 %v290_v31 }
 0x133   :  { %378 = vmatmul.mubr.bf16.vlgmr.msra.gmra.mrb[4].mxu0 %v228_v32 }
 0x206   :  { %v265_v34 = vpop.f32.mrb[4].mxu0 }
 0x207   :  { %v266_v35 = vadd.f32 %v265_v34, %v230_v33  ;;  %v379_v36 = vpop.f32.mrb[5].mxu0 }
 0x208   :  { %v268_v37 = vpop.f32.mrb[6].mxu0 }
 0x209   :  { %v380_v38 = vpop.f32.mrb[7].mxu0  ;;  %v272_v39 = vsel %vm271_vm3, %v266_v35, -inf }
 0x20a   :  { %273 = vmax.xlane.f32.xlu0 %v272_v39 }
 0x297   :  { %v274_v40 = vpop.xlane.xlu0 %273 }
 0x298   :  { %v275_v41 = vsub.f32 %v266_v35, %v274_v40 }
 0x29a   :  { %v276_v42 = vmul.f32 1.442695, %v275_v41 }
 0x29c   :  { %407 = vpow2.f32 %v276_v42 }
 0x2a6   :  { %v408_v43 = vpop.eup %407 }
 0x2a7   :  { %v278_v44 = vsel %vm271_vm3, %v408_v43, 0.0 }
 0x2a8   :  { %279 = vadd.xlane.f32.xlu0 %v278_v44 }
 0x335   :  { %v280_v45 = vpop.xlane.xlu0 %279 }
 0x336   :  { %409 = vrcp.f32 %v280_v45 }
 0x340   :  { %v410_v46 = vpop.eup %409 }
 0x341   :  { %v282_v47 = vmul.f32 %v410_v46, %v408_v43 }
 0x343   :  { %v283_v48 = vpack.c.bf16 %v282_v47, %v282_v47 }
 0x345   :  { %384 = vmatmul.mubr.msk.bf16.vlgmr.msra.gmra.mrb[4].mxu1 %vm271_vm3, %v283_v48 }
 0x418   :  { %v326_v49 = vpop.f32.mrb[4].mxu1 }
 0x419   :  { %332 = vst [vmem:[#allocation10] sm:$0xff] %v326_v49  ;;  %v385_v50 = vpop.f32.mrb[5].mxu1 }
 0x41a   :  { %v329_v51 = vpop.f32.mrb[6].mxu1 }
 0x41b   :  { %510 = shalt.err (!%p507_p8)
}
 0x41c   :  { %s511_s11 = scalar_lea.hbm %s663_s7, 128 }
 0x41d   :  { %p512_p9 = scmp.ne.s32.totalorder %s663_s7, %s511_s11  ;;  %p515_p10 = scmp.lt.u32.totalorder %s511_s11, %s663_s7 }
 0x41f   :  { %p517_p11 = pnand %p515_p10, %p512_p9 }
 0x421   :  { %520 = shalt.err (!%p517_p11)
}
 0x422   :  { %342 = dma.vmem_to_hbm [thread:$0]  %s340_s6, 128, %s663_s7, [#allocation4]   ;;  %v386_v52 = vpop.f32.mrb[7].mxu1 }
 0x423   :  { %527 = dma.done.wait [#allocation4], 128  }
 0x424   :  { %528 = vsyncadd [#allocation4], 4294967168 }
 0x425   :  { %346 = vsyncpa [#allocation3], 1 }
 0x426   :  { %347 = vsyncpa [#allocation6], 1 }
 0x427   :  { %348 = vsyncpa [#allocation9], 1 }
 0x428   :  { %349 = vsyncpa [#allocation4], 1 }

</bundles_post_ra>
